<compile_context>
chip_gen: v7x
topology: tpu7x:2x2x1
jax: 0.10.0
libtpu: 0.0.40
codegen_flags: <defaults>
</compile_context>

<pallas_src>
import functools

import jax
import jax.numpy as jnp
import numpy as np
from jax.experimental import pallas as pl
from jax.experimental.pallas import tpu as pltpu

_MIB = 2 ** 20


@functools.lru_cache(maxsize=1)
def _vmem_capacity_bytes():
    try:
        return int(pltpu.get_tpu_info().vmem_capacity_bytes)
    except Exception:
        return 64 * _MIB          # conservative default (v7x-class)


def _padded_rows(rows, itemsize):
    """Rows padded to the sublane granule for a given element size."""
    granule = 8 * max(1, 4 // int(itemsize))
    return -(-rows // granule) * granule


def _pick_tile_m(hw, c, itemsize, vmem_cap):
    """Lane tile: big, 128-aligned, VMEM-budgeted per generation."""
    c_pad = _padded_rows(c, itemsize)
    if vmem_cap <= 64 * _MIB:                 # v7x-class: 64 MiB VMEM / TC
        budget, max_lanes = 6 * _MIB, 32768
    else:                                     # v5e / v6e: 128 MiB VMEM
        budget, max_lanes = 12 * _MIB, 65536
    cap = (budget // max(1, c_pad * itemsize)) // 128 * 128
    target = int(max(128, min(max_lanes, cap)))
    if hw <= target:
        return hw                             # single tile, full pixel extent
    if hw % 128 == 0:
        # Only accept an exact divisor if it is not pathologically small;
        # otherwise prefer the large tile with an in-kernel masked tail.
        floor = max(2048, target // 2)
        tm = target
        while tm >= floor:
            if hw % tm == 0:
                return tm
            tm -= 128
    return target                             # ragged tail masked in-kernel


def _ce2d_kernel(logits_ref, tgt_ref, w_ref, out_ref, num_acc, den_acc,
                 *, hw, tile_m, t_inner, needs_mask):
    t = pl.program_id(2)

    @pl.when(t == 0)
    def _():
        num_acc[...] = jnp.zeros_like(num_acc)
        den_acc[...] = jnp.zeros_like(den_acc)

    # f32 math everywhere (v5e has no bf16 VPU/EUP; kernel is HBM-bound anyway).
    logits = logits_ref[...].astype(jnp.float32)        # (C, TM)
    tgt = tgt_ref[...]                                   # (1, TM) int32
    w = w_ref[...].astype(jnp.float32)                   # (C, 1)

    if needs_mask:
        # Ragged tail / padded grid step: sanitize BEFORE the LSE so no
        # NaN/Inf garbage from the unpadded DMA region can leak in.
        pt = pl.program_id(1) * t_inner + t              # global pixel tile id
        lane = jax.lax.broadcasted_iota(jnp.int32, tgt.shape, 1)   # (1, TM)
        valid = (pt * tile_m + lane) < hw
        logits = jnp.where(valid, logits, 0.0)
        tgt = jnp.where(valid, tgt, -1)

    # Shifted logits reused for both exp-sum and the target pick.
    m = jnp.max(logits, axis=0, keepdims=True)                        # (1, TM)
    x = logits - m                                                    # (C, TM)
    sum_exp = jnp.sum(jnp.exp(x), axis=0, keepdims=True)              # (1, TM)

    cls = jax.lax.broadcasted_iota(jnp.int32, x.shape, 0)             # (C, TM)
    is_tgt = cls == tgt                                               # (C, TM)
    picked_x = jnp.sum(jnp.where(is_tgt, x, 0.0), axis=0, keepdims=True)
    picked_w = jnp.sum(jnp.where(is_tgt, w, 0.0), axis=0, keepdims=True)

    # -w * logp = w * (lse - logit) = w * (log(sum_exp) - (logit - m))
    num_acc[...] = num_acc[...] + picked_w * (jnp.log(sum_exp) - picked_x)
    den_acc[...] = den_acc[...] + picked_w

    @pl.when(t == pl.num_programs(2) - 1)
    def _():
        ns = jnp.sum(num_acc[...])
        ds = jnp.sum(den_acc[...])
        lane = jax.lax.broadcasted_iota(jnp.int32, out_ref.shape, 1)  # (1,128)
        out_ref[...] = jnp.where(lane == 0, ns, jnp.where(lane == 1, ds, 0.0))


def _cross_entropy_2d_impl(outputs, targets, weight, tile_override):
    N, C, H, W = outputs.shape
    HW = H * W

    if weight is None:
        weight = jnp.ones((C,), dtype=jnp.float32)
    weight2d = jnp.asarray(weight, jnp.float32).reshape(C, 1)

    # Free, contiguous reshapes -- no transpose, no pad of the big tensor.
    logits3 = outputs.reshape(N, C, HW)
    tgt3 = targets.astype(jnp.int32).reshape(N, 1, HW)

    itemsize = jnp.dtype(outputs.dtype).itemsize
    vmem_cap = _vmem_capacity_bytes()
    tile_m = int(tile_override) if tile_override else _pick_tile_m(
        HW, C, itemsize, vmem_cap)

    T = -(-HW // tile_m)                       # total pixel tiles (cdiv)
    # Megacore: second parallel axis over pixel chunks so both v7x TCs run
    # even when N == 1.  Degenerate (P == 1) otherwise / on 1-TC chips.
    P = 2 if (N == 1 and T >= 2) else 1
    t_inner = -(-T // P)
    needs_mask = (HW % tile_m != 0) or (P * t_inner != T)

    def pix_block(p, t):
        # Clamp handles the padded grid step when T is not divisible by P;
        # the in-kernel mask zeroes its contribution.
        return jnp.minimum(p * t_inner + t, T - 1)

    kernel = functools.partial(_ce2d_kernel, hw=HW, tile_m=tile_m,
                               t_inner=t_inner, needs_mask=needs_mask)

    # --- VMEM accounting with padded block shapes --------------------------
    c_pad_in = _padded_rows(C, itemsize)
    logits_block = c_pad_in * tile_m * itemsize
    tgt_block = 8 * tile_m * 4                 # (1, TM) int32 pads to 8 rows
    w_block = _padded_rows(C, 4) * 128 * 4     # (C, 1) pads to 128 lanes
    out_block = 8 * 128 * 4
    scratch = 2 * 8 * tile_m * 4               # (1, TM) f32 pads to 8 rows

    deep_buffer = (vmem_cap <= 64 * _MIB) and (t_inner >= 3)
    n_logits_buf = 3 if deep_buffer else 2

    vmem_need = (n_logits_buf * logits_block + 2 * tgt_block + 2 * w_block
                 + 2 * out_block + scratch + 2 * _MIB)
    vmem_ceiling = 48 * _MIB if vmem_cap <= 64 * _MIB else 100 * _MIB
    vmem_limit = int(min(max(vmem_need, 32 * _MIB), vmem_ceiling))

    logits_kwargs = {}
    if deep_buffer:
        # Hide exposed per-step DMA on v7x's higher-BW HBM when streaming.
        logits_kwargs["pipeline_mode"] = pl.Buffered(3)
    logits_spec = pl.BlockSpec((pl.Squeezed(), C, tile_m),
                               lambda n, p, t: (n, 0, pix_block(p, t)),
                               **logits_kwargs)

    parts = pl.pallas_call(
        kernel,
        out_shape=jax.ShapeDtypeStruct((N, P, 128), jnp.float32),
        grid_spec=pltpu.PrefetchScalarGridSpec(
            num_scalar_prefetch=0,
            grid=(N, P, t_inner),
            in_specs=[
                # logits tile: (C, tile_m) -- classes on sublanes, pixels lanes
                logits_spec,
                # targets tile: (1, tile_m)
                pl.BlockSpec((pl.Squeezed(), 1, tile_m),
                             lambda n, p, t: (n, 0, pix_block(p, t))),
                # class weights: (C, 1), resident
                pl.BlockSpec((C, 1), lambda n, p, t: (0, 0)),
            ],
            out_specs=pl.BlockSpec((pl.Squeezed(), 1, 128),
                                   lambda n, p, t: (n, p, 0)),
            scratch_shapes=[
                pltpu.VMEM((1, tile_m), jnp.float32),   # per-lane numerator
                pltpu.VMEM((1, tile_m), jnp.float32),   # per-lane denominator
            ],
        ),
        compiler_params=pltpu.CompilerParams(
            dimension_semantics=("parallel", "parallel", "arbitrary"),
            vmem_limit_bytes=vmem_limit),
    )(logits3, tgt3, weight2d)

    num = jnp.sum(parts[..., 0])
    den = jnp.sum(parts[..., 1])
    return num / den


@functools.partial(jax.jit, static_argnames=("tile_override",))
def cross_entropy_loss_2d(outputs, targets, weight=None, tile_override=None):
    """outputs: (N, C, H, W) float logits; targets: (N, H, W) int class ids.

    weight: optional (C,) per-class weights (None == ones, like PyTorch).
    tile_override: testing-only static knob forcing a specific lane tile."""
    return _cross_entropy_2d_impl(outputs, targets, weight, tile_override)


def _reference(outputs, targets, weight=None):
    N, C, H, W = outputs.shape
    if weight is None:
        weight = jnp.ones((C,), dtype=jnp.float32)
    logp = jax.nn.log_softmax(outputs.astype(jnp.float32), axis=1)      # NCHW
    t = targets.astype(jnp.int32)
    picked = jnp.take_along_axis(logp, t[:, None, :, :], axis=1)[:, 0]  # (N,H,W)
    w = jnp.asarray(weight, jnp.float32)[t]                             # (N,H,W)
    return jnp.sum(-w * picked) / jnp.sum(w)


if __name__ == "__main__":
    key = jax.random.PRNGKey(0)
    k1, k2, k3, k4, k5 = jax.random.split(key, 5)

    # --- 1) Module default: CrossEntropyLoss2d(weight=None) ----------------
    N, C, H, W = 2, 4, 16, 16
    outputs = jax.random.normal(k1, (N, C, H, W), dtype=jnp.float32)
    targets = jax.random.randint(k2, (N, H, W), 0, C, dtype=jnp.int32)

    loss = jax.block_until_ready(cross_entropy_loss_2d(outputs, targets))
    np.testing.assert_allclose(np.asarray(loss),
                               np.asarray(_reference(outputs, targets)),
                               rtol=1e-5, atol=1e-5)

    # --- 2) Weighted variant (same kernel, class-weight path) --------------
    wvec = jax.random.uniform(k3, (C,), dtype=jnp.float32) + 0.5
    loss_w = jax.block_until_ready(cross_entropy_loss_2d(outputs, targets, wvec))
    np.testing.assert_allclose(np.asarray(loss_w),
                               np.asarray(_reference(outputs, targets, wvec)),
                               rtol=1e-5, atol=1e-5)

    # --- 3) Multi-tile path: N=1 (megacore pixel-chunk axis), ragged tail,
    #        odd tile count (exercises the clamped/padded grid step). --------
    N2, C2, H2, W2 = 1, 3, 18, 18            # HW = 324, tile 128 -> 3 tiles
    outputs2 = jax.random.normal(k4, (N2, C2, H2, W2), dtype=jnp.float32)
    targets2 = jax.random.randint(k5, (N2, H2, W2), 0, C2, dtype=jnp.int32)
    loss2 = jax.block_until_ready(
        cross_entropy_loss_2d(outputs2, targets2, tile_override=128))
    np.testing.assert_allclose(np.asarray(loss2),
                               np.asarray(_reference(outputs2, targets2)),
                               rtol=1e-5, atol=1e-5)

    print("KERNEL_OK")
</pallas_src>

<mosaic_0001>
module attributes {stable_mosaic.version = 11 : i64} {
  func.func @_ce2d_kernel(%arg0: i32, %arg1: i32, %arg2: i32, %arg3: memref<1x4x256xf32, #tpu.memory_space<vmem>>, %arg4: memref<1x1x256xi32, #tpu.memory_space<vmem>>, %arg5: memref<4x1xf32, #tpu.memory_space<vmem>>, %arg6: memref<1x1x128xf32, #tpu.memory_space<vmem>>, %arg7: memref<1x256xf32, #tpu.memory_space<vmem>>, %arg8: memref<1x256xf32, #tpu.memory_space<vmem>>) attributes {dimension_semantics = [#tpu.dimension_semantics<parallel>, #tpu.dimension_semantics<parallel>, #tpu.dimension_semantics<arbitrary>], iteration_bounds = array<i64: 2, 1, 1>, scalar_prefetch = 0 : i64, scratch_operands = 2 : i64, tpu.core_type = #tpu.core_type<tc>, window_params = [{transform_indices = @transform_0, window_bounds = array<i64: 1, 4, 256>}, {transform_indices = @transform_1, window_bounds = array<i64: 1, 1, 256>}, {pipeline_mode = #tpu.pipeline_mode<synchronous>, transform_indices = @transform_2, window_bounds = array<i64: 4, 1>}, {transform_indices = @transform_3, window_bounds = array<i64: 1, 1, 128>}]} {
    %c0_i32 = arith.constant 0 : i32
    %0 = arith.cmpi eq, %arg2, %c0_i32 : i32
    %1 = arith.extui %0 : i1 to i32
    %c0_i32_0 = arith.constant 0 : i32
    %2 = arith.cmpi ne, %1, %c0_i32_0 : i32
    scf.if %2 {
      %cst_23 = arith.constant 0.000000e+00 : f32
      %40 = vector.broadcast %cst_23 : f32 to vector<1x256xf32>
      %c0_24 = arith.constant 0 : index
      %c0_25 = arith.constant 0 : index
      %41 = vector.load %arg7[%c0_24, %c0_25] : memref<1x256xf32, #tpu.memory_space<vmem>>, vector<1x256xf32>
      tpu.vector_store %arg7[%c0_24, %c0_25], %40 {strides = array<i32>} : memref<1x256xf32, #tpu.memory_space<vmem>>, vector<1x256xf32>,
      %cst_26 = arith.constant 0.000000e+00 : f32
      %42 = vector.broadcast %cst_26 : f32 to vector<1x256xf32>
      %c0_27 = arith.constant 0 : index
      %c0_28 = arith.constant 0 : index
      %43 = vector.load %arg8[%c0_27, %c0_28] : memref<1x256xf32, #tpu.memory_space<vmem>>, vector<1x256xf32>
      tpu.vector_store %arg8[%c0_27, %c0_28], %42 {strides = array<i32>} : memref<1x256xf32, #tpu.memory_space<vmem>>, vector<1x256xf32>,
    } else {
    }
    %c0 = arith.constant 0 : index
    %c0_1 = arith.constant 0 : index
    %c0_2 = arith.constant 0 : index
    %3 = vector.load %arg3[%c0, %c0_1, %c0_2] : memref<1x4x256xf32, #tpu.memory_space<vmem>>, vector<1x4x256xf32>
    %4 = vector.shape_cast %3 : vector<1x4x256xf32> to vector<4x256xf32>
    %c0_3 = arith.constant 0 : index
    %c0_4 = arith.constant 0 : index
    %c0_5 = arith.constant 0 : index
    %5 = vector.load %arg4[%c0_3, %c0_4, %c0_5] : memref<1x1x256xi32, #tpu.memory_space<vmem>>, vector<1x1x256xi32>
    %6 = vector.shape_cast %5 : vector<1x1x256xi32> to vector<1x256xi32>
    %c0_6 = arith.constant 0 : index
    %c0_7 = arith.constant 0 : index
    %7 = vector.load %arg5[%c0_6, %c0_7] : memref<4x1xf32, #tpu.memory_space<vmem>>, vector<4x1xf32>
    %cst = arith.constant dense<0xFF800000> : vector<256xf32>
    %8 = vector.multi_reduction <maximumf>, %4, %cst [0] : vector<4x256xf32> to vector<256xf32>
    %9 = vector.shape_cast %8 : vector<256xf32> to vector<1x256xf32>
    %10 = vector.broadcast %9 : vector<1x256xf32> to vector<4x256xf32>
    %11 = arith.subf %4, %10 : vector<4x256xf32>
    %12 = math.exp %11 : vector<4x256xf32>
    %cst_8 = arith.constant dense<0.000000e+00> : vector<256xf32>
    %13 = vector.multi_reduction <add>, %12, %cst_8 [0] : vector<4x256xf32> to vector<256xf32>
    %14 = vector.shape_cast %13 : vector<256xf32> to vector<1x256xf32>
    %15 = tpu.iota {dimensions = array<i32: 0>} : vector<4x256xi32>
    %16 = vector.broadcast %6 : vector<1x256xi32> to vector<4x256xi32>
    %17 = arith.cmpi eq, %15, %16 : vector<4x256xi32>
    %cst_9 = arith.constant 0.000000e+00 : f32
    %18 = vector.broadcast %cst_9 : f32 to vector<4x256xf32>
    %19 = arith.select %17, %11, %18 : vector<4x256xi1>, vector<4x256xf32>
    %cst_10 = arith.constant dense<0.000000e+00> : vector<256xf32>
    %20 = vector.multi_reduction <add>, %19, %cst_10 [0] : vector<4x256xf32> to vector<256xf32>
    %21 = vector.shape_cast %20 : vector<256xf32> to vector<1x256xf32>
    %cst_11 = arith.constant 0.000000e+00 : f32
    %22 = vector.shape_cast %7 : vector<4x1xf32> to vector<4x1xf32>
    %23 = vector.broadcast %22 : vector<4x1xf32> to vector<4x256xf32>
    %24 = vector.broadcast %cst_11 : f32 to vector<4x256xf32>
    %25 = arith.select %17, %23, %24 : vector<4x256xi1>, vector<4x256xf32>
    %cst_12 = arith.constant dense<0.000000e+00> : vector<256xf32>
    %26 = vector.multi_reduction <add>, %25, %cst_12 [0] : vector<4x256xf32> to vector<256xf32>
    %27 = vector.shape_cast %26 : vector<256xf32> to vector<1x256xf32>
    %c0_13 = arith.constant 0 : index
    %c0_14 = arith.constant 0 : index
    %28 = vector.load %arg7[%c0_13, %c0_14] : memref<1x256xf32, #tpu.memory_space<vmem>>, vector<1x256xf32>
    %29 = math.log %14 : vector<1x256xf32>
    %30 = arith.subf %29, %21 : vector<1x256xf32>
    %31 = arith.mulf %27, %30 : vector<1x256xf32>
    %32 = arith.addf %28, %31 : vector<1x256xf32>
    %c0_15 = arith.constant 0 : index
    %c0_16 = arith.constant 0 : index
    %33 = vector.load %arg7[%c0_15, %c0_16] : memref<1x256xf32, #tpu.memory_space<vmem>>, vector<1x256xf32>
    tpu.vector_store %arg7[%c0_15, %c0_16], %32 {strides = array<i32>} : memref<1x256xf32, #tpu.memory_space<vmem>>, vector<1x256xf32>,
    %c0_17 = arith.constant 0 : index
    %c0_18 = arith.constant 0 : index
    %34 = vector.load %arg8[%c0_17, %c0_18] : memref<1x256xf32, #tpu.memory_space<vmem>>, vector<1x256xf32>
    %35 = arith.addf %34, %27 : vector<1x256xf32>
    %c0_19 = arith.constant 0 : index
    %c0_20 = arith.constant 0 : index
    %36 = vector.load %arg8[%c0_19, %c0_20] : memref<1x256xf32, #tpu.memory_space<vmem>>, vector<1x256xf32>
    tpu.vector_store %arg8[%c0_19, %c0_20], %35 {strides = array<i32>} : memref<1x256xf32, #tpu.memory_space<vmem>>, vector<1x256xf32>,
    %c0_i32_21 = arith.constant 0 : i32
    %37 = arith.cmpi eq, %arg2, %c0_i32_21 : i32
    %38 = arith.extui %37 : i1 to i32
    %c0_i32_22 = arith.constant 0 : i32
    %39 = arith.cmpi ne, %38, %c0_i32_22 : i32
    scf.if %39 {
      %c0_23 = arith.constant 0 : index
      %c0_24 = arith.constant 0 : index
      %40 = vector.load %arg7[%c0_23, %c0_24] : memref<1x256xf32, #tpu.memory_space<vmem>>, vector<1x256xf32>
      %41 = vector.shape_cast %40 : vector<1x256xf32> to vector<1x1x256xf32>
      %cst_25 = arith.constant dense<0.000000e+00> : vector<1xf32>
      %42 = vector.multi_reduction <add>, %41, %cst_25 [1, 2] : vector<1x1x256xf32> to vector<1xf32>
      %43 = vector.shape_cast %42 : vector<1xf32> to vector<1x1x1xf32>
      %44 = vector.extract %43[0, 0, 0] : f32 from vector<1x1x1xf32>
      %c0_26 = arith.constant 0 : index
      %c0_27 = arith.constant 0 : index
      %45 = vector.load %arg8[%c0_26, %c0_27] : memref<1x256xf32, #tpu.memory_space<vmem>>, vector<1x256xf32>
      %46 = vector.shape_cast %45 : vector<1x256xf32> to vector<1x1x256xf32>
      %cst_28 = arith.constant dense<0.000000e+00> : vector<1xf32>
      %47 = vector.multi_reduction <add>, %46, %cst_28 [1, 2] : vector<1x1x256xf32> to vector<1xf32>
      %48 = vector.shape_cast %47 : vector<1xf32> to vector<1x1x1xf32>
      %49 = vector.extract %48[0, 0, 0] : f32 from vector<1x1x1xf32>
      %50 = tpu.iota {dimensions = array<i32: 1>} : vector<1x128xi32>
      %c0_i32_29 = arith.constant 0 : i32
      %51 = vector.broadcast %c0_i32_29 : i32 to vector<1x128xi32>
      %52 = arith.cmpi eq, %50, %51 : vector<1x128xi32>
      %c1_i32 = arith.constant 1 : i32
      %53 = vector.broadcast %c1_i32 : i32 to vector<1x128xi32>
      %54 = arith.cmpi eq, %50, %53 : vector<1x128xi32>
      %cst_30 = arith.constant 0.000000e+00 : f32
      %55 = vector.broadcast %49 : f32 to vector<1x128xf32>
      %56 = vector.broadcast %cst_30 : f32 to vector<1x128xf32>
      %57 = arith.select %54, %55, %56 : vector<1x128xi1>, vector<1x128xf32>
      %58 = vector.broadcast %44 : f32 to vector<1x128xf32>
      %59 = arith.select %52, %58, %57 : vector<1x128xi1>, vector<1x128xf32>
      %c0_31 = arith.constant 0 : index
      %c0_32 = arith.constant 0 : index
      %c0_33 = arith.constant 0 : index
      %60 = vector.load %arg6[%c0_31, %c0_32, %c0_33] : memref<1x1x128xf32, #tpu.memory_space<vmem>>, vector<1x1x128xf32>
      %61 = vector.shape_cast %60 : vector<1x1x128xf32> to vector<1x128xf32>
      %62 = vector.shape_cast %59 : vector<1x128xf32> to vector<1x1x128xf32>
      tpu.vector_store %arg6[%c0_31, %c0_32, %c0_33], %62 {strides = array<i32>} : memref<1x1x128xf32, #tpu.memory_space<vmem>>, vector<1x1x128xf32>,
    } else {
    }
    return
  }
  func.func @transform_0(%arg0: i32, %arg1: i32, %arg2: i32) -> (i32, i32, i32) {
    %c1_i32 = arith.constant 1 : i32
    %0 = arith.muli %arg1, %c1_i32 : i32
    %1 = arith.addi %0, %arg2 : i32
    %c0_i32 = arith.constant 0 : i32
    %2 = arith.minsi %1, %c0_i32 : i32
    %c0_i32_0 = arith.constant 0 : i32
    %c0_i32_1 = arith.constant 0 : i32
    return %arg0, %c0_i32_0, %2 : i32, i32, i32
  }
  func.func @transform_1(%arg0: i32, %arg1: i32, %arg2: i32) -> (i32, i32, i32) {
    %c1_i32 = arith.constant 1 : i32
    %0 = arith.muli %arg1, %c1_i32 : i32
    %1 = arith.addi %0, %arg2 : i32
    %c0_i32 = arith.constant 0 : i32
    %2 = arith.minsi %1, %c0_i32 : i32
    %c0_i32_0 = arith.constant 0 : i32
    %c0_i32_1 = arith.constant 0 : i32
    return %arg0, %c0_i32_0, %2 : i32, i32, i32
  }
  func.func @transform_2(%arg0: i32, %arg1: i32, %arg2: i32) -> (i32, i32) {
    %c0_i32 = arith.constant 0 : i32
    %c0_i32_0 = arith.constant 0 : i32
    %c0_i32_1 = arith.constant 0 : i32
    return %c0_i32, %c0_i32_0 : i32, i32
  }
  func.func @transform_3(%arg0: i32, %arg1: i32, %arg2: i32) -> (i32, i32, i32) {
    %c0_i32 = arith.constant 0 : i32
    %c0_i32_0 = arith.constant 0 : i32
    return %arg0, %arg1, %c0_i32 : i32, i32, i32
  }
}

</mosaic_0001>

<bundles_post_ra>
// kernel: cross_entropy_loss_2d.1
= control target key start
LH: loop header
LB: loop body
LE: loop exit
PB: predicated region body
PF: predicated region fallthrough
CT: control target
= control target key end

     0   :  { %s693_s12 = smov 0   ;;  %s695_s13 = smov 0   ;;  %s793_s0 = inlined_call_operand.vmem [shape: f32[2,4,256], index: 0, kind: input, shape index: {}]   ;;  %s794_s1 = inlined_call_operand.vmem [shape: s32[2,1,256], index: 1, kind: input, shape index: {}]   ;;  %s795_s2 = inlined_call_operand.vmem [shape: f32[4,1], index: 2, kind: input, shape index: {}]   ;;  %s796_s3 = inlined_call_operand.vmem [shape: f32[2,1,128], index: 3, kind: output, shape index: {}]  }
   0x1   :  { %s697_s14 = smov 0  }
   0x2 LB: > { %s32_s15 = sadd.s32 1, %s664_s13  ;;  %p600_p0 = scmp.ge.s32.totalorder %s668_s14, 1  ;;  %s668_s14 = sphi %s697_s14, %s13_s14   ;;  %s664_s13 = sphi %s695_s13, %s804_s13   ;;  %s660_s12 = sphi %s693_s12, %s803_s12  }
   0x3   : > { %p34_p1 = scmp.ge.s32.totalorder %s32_s15, 2  ;;  %p205_p2 = scmp.lt.s32.totalorder %s668_s14, 3 }
   0x5   : > { %s806_s15 = smov (%p34_p1, %s32_s15), 0  ;;  %p206_p3 = pnand %p600_p0, %p205_p2 }
   0x6   : > { %v297_v0 = vld [vmem:[%s795_s2] sm:$0xf] (!%p206_p3)  ;;  %v289_v1 = vlaneseq (!%p206_p3)  ;;  %v670_v2 = vmov (!%p206_p3), 0   ;;  %v671_v4 = vmov (!%p206_p3), 0.0   ;;  %p252_p4 = scmp.lt.s32.totalorder (!%p206_p3), %s660_s12, 1  ;;  %vm301_vm1 = vcmask (!%p206_p3), 1043456  }
   0x7   : > { %209 = sbr.rel (%p206_p3) target bundleno = 382 (0x17e), region = 32  ;;  %638 = vset.pattern.permute.xlu0 (!%p206_p3), %v670_v2  ;;  %vm461_vm4 = vcmask (!%p206_p3), 1040384  }
   0x8   : > { %373 = vperm.xlu0 (!%p206_p3), %638, %v297_v0   ;;  %vm715_vm0 = vcmp.lt.s32.totalorder (!%p206_p3), %v289_v1, 256  ;;  %v733_v26 = vshrl.u32 (!%p206_p3), %v289_v1, 7 }
   0x9   : > { %293 = vst.msk [vmem:[#allocation2] sm:$0x3] (!%p206_p3), %vm715_vm0, %v671_v4  ;;  %294 = vst.msk [vmem:[#allocation3] sm:$0x3] (!%p206_p3), %vm715_vm0, %v671_v4 }
   0xa   : > { %v741_v30 = vsub.s32 (!%p206_p3), 0, %v733_v26  ;;  %v744_v31 = vsub.s32 (!%p206_p3), 1, %v733_v26 }
   0xe   : > { %s808_s12 = smov (!%p252_p4, %s660_s12), 1 }
   0xf   : > { %s606_s18 = sshll.u32 %s808_s12, 3  ;;  %s603_s22 = sshll.u32 %s808_s12, 1 }
  0x10   : > { %s259_s21 = scalar_lea.vmem %s793_s0, %s606_s18  ;;  %s274_s25 = scalar_lea.vmem %s794_s1, %s603_s22  ;;  %v392_v41 = vld [vmem:[#allocation2] sm:$0x3] }
  0x11   : > { %v295_v5 = vld [vmem:[%s259_s21] sm:$0xff]  ;;  %s284_s30 = scalar_lea.vmem %s796_s3, %s808_s12 }
  0x12   : > { %v299_v6 = vcombine.high %v295_v5, %v295_v5  ;;  %v302_v7 = vsel %vm301_vm1, %v295_v5, -inf  ;;  %v296_v32 = vld [vmem:[%s274_s25] sm:$0x3] }
  0x13   : > { %v303_v9 = vrot.slane %v302_v7, 4  ;;  %v345_v35 = vrot.slane %v296_v32, %v741_v30  ;;  %v349_v36 = vrot.slane %v296_v32, %v744_v31 }
  0x14   : > { %v309_v8 = vsel %vm301_vm1, %v299_v6, -inf }
  0x15   : > { %v310_v10 = vrot.slane %v309_v8, 4  ;;  %v304_v11 = vmax.f32 %v302_v7, %v303_v9  ;;  %vm749_vm2 = vcmp.eq.s32.totalorder %v733_v26, %v345_v35  ;;  %vm754_vm3 = vcmp.eq.s32.totalorder %v733_v26, %v349_v36 }
  0x17   : > { %v311_v12 = vmax.f32 %v309_v8, %v310_v10  ;;  %v305_v13 = vrot.slane %v304_v11, 2  ;;  %v672_v10 = vmov 1966171168  }
  0x19   : > { %v312_v14 = vrot.slane %v311_v12, 2  ;;  %v306_v15 = vmax.f32 %v304_v11, %v305_v13  ;;  %v405_v11 = vunpack.c.l.s4 %v672_v10 }
  0x1b   : > { %v313_v16 = vmax.f32 %v311_v12, %v312_v14  ;;  %v307_v17 = vrot.slane %v306_v15, 1 }
  0x1d   : > { %v314_v18 = vrot.slane %v313_v16, 1  ;;  %v308_v19 = vmax.f32 %v306_v15, %v307_v17 }
  0x1f   : > { %v315_v20 = vmax.f32 %v313_v16, %v314_v18 }
  0x21   : > { %v318_v21 = vcombine.low %v308_v19, %v315_v20  ;;  %v406_v20 = vunpack.c.0.s8 %v405_v11 }
  0x23   : > { %v320_v22 = vsub.f32 %v295_v5, %v318_v21  ;;  %v409_v32 = vsub.s32 %v406_v20, %v733_v26 }
  0x25   : > { %v321_v23 = vmul.f32 1.442695, %v320_v22  ;;  %v353_v38 = vcombine.high %v320_v22, %v320_v22  ;;  %v355_v43 = vsel %vm749_vm2, %v320_v22, 0.0 }
  0x26   : > { %v357_v47 = vsel %vm301_vm1, %v355_v43, 0.0 }
  0x27   : > { %640 = vpow2.f32 %v321_v23  ;;  %v356_v44 = vsel %vm754_vm3, %v353_v38, 0.0  ;;  %v358_v51 = vrot.slane %v357_v47, 4  ;;  %v425_v38 = vld [vmem:[#allocation3] sm:$0x3] }
  0x28   : > { %v364_v48 = vsel %vm301_vm1, %v356_v44, 0.0 }
  0x29   : > { %v365_v52 = vrot.slane %v364_v48, 4  ;;  %v359_v55 = vadd.f32 %v358_v51, %v357_v47 }
  0x2b   : > { %v366_v56 = vadd.f32 %v365_v52, %v364_v48  ;;  %v360_v57 = vrot.slane %v359_v55, 2 }
  0x2d   : > { %v367_v58 = vrot.slane %v366_v56, 2  ;;  %v361_v59 = vadd.f32 %v360_v57, %v359_v55 }
  0x2f   : > { %v368_v60 = vadd.f32 %v367_v58, %v366_v56  ;;  %v362_v0 = vrot.slane %v361_v59, 1 }
  0x31   : > { %v641_v24 = vpop.eup %640  ;;  %v369_v2 = vrot.slane %v368_v60, 1  ;;  %v363_v14 = vadd.f32 %v362_v0, %v361_v59 }
  0x32   : > { %v324_v25 = vcombine.high %v641_v24, %v641_v24  ;;  %v326_v27 = vsel %vm301_vm1, %v641_v24, 0.0 }
  0x33   : > { %v327_v29 = vrot.slane %v326_v27, 4  ;;  %v370_v15 = vadd.f32 %v369_v2, %v368_v60 }
  0x34   : > { %v333_v28 = vsel %vm301_vm1, %v324_v25, 0.0 }
  0x35   : > { %v334_v33 = vrot.slane %v333_v28, 4  ;;  %v328_v34 = vadd.f32 %v327_v29, %v326_v27 }
  0x37   : > { %v335_v37 = vadd.f32 %v334_v33, %v333_v28  ;;  %v329_v39 = vrot.slane %v328_v34, 2 }
  0x39   : > { %v336_v42 = vrot.slane %v335_v37, 2  ;;  %v330_v45 = vadd.f32 %v329_v39, %v328_v34 }
  0x3b   : > { %v337_v46 = vadd.f32 %v336_v42, %v335_v37  ;;  %v331_v49 = vrot.slane %v330_v45, 1 }
  0x3d   : > { %v338_v50 = vrot.slane %v337_v46, 1  ;;  %v332_v53 = vadd.f32 %v331_v49, %v330_v45 }
  0x3f   : > { %v339_v54 = vadd.f32 %v338_v50, %v337_v46  ;;  %642 = vlog2.f32 %v332_v53 }
  0x41   : > { %644 = vlog2.f32 %v339_v54 }
  0x49   : > { %v643_v6 = vpop.eup %642 }
  0x4a   : > { %v394_v18 = vmul.f32 0.6931472, %v643_v6 }
  0x4b   : > { %v645_v9 = vpop.eup %644 }
  0x4c   : > { %v396_v19 = vmul.f32 0.6931472, %v645_v9  ;;  %v397_v25 = vsub.f32 %v394_v18, %v363_v14 }
  0x4e   : > { %v398_v27 = vsub.f32 %v396_v19, %v370_v15 }
  0x87   : > { %v374_v61 = vpop.permute.xlu0 %373 }
  0x88   : > { %v376_v62 = vsel %vm749_vm2, %v374_v61, 0.0  ;;  %v377_v63 = vsel %vm754_vm3, %v374_v61, 0.0 }
  0x89   : > { %v378_v4 = vsel %vm301_vm1, %v376_v62, 0.0  ;;  %v385_v5 = vsel %vm301_vm1, %v377_v63, 0.0 }
  0x8a   : > { %v379_v7 = vrot.slane %v378_v4, 4  ;;  %v386_v8 = vrot.slane %v385_v5, 4 }
  0x8c   : > { %v380_v12 = vadd.f32 %v379_v7, %v378_v4  ;;  %v387_v13 = vadd.f32 %v386_v8, %v385_v5  ;;  %v499_v5 = vand.u32 127, %v289_v1 }
  0x8e   : > { %v381_v16 = vrot.slane %v380_v12, 2  ;;  %v388_v17 = vrot.slane %v387_v13, 2  ;;  %vm501_vm5 = vcmp.eq.s32.totalorder %v499_v5, 1  ;;  %vm500_vm6 = vcmp.eq.s32.totalorder %v499_v5, 0 }
  0x90   : > { %v382_v21 = vadd.f32 %v381_v16, %v380_v12  ;;  %v389_v22 = vadd.f32 %v388_v17, %v387_v13 }
  0x92   : > { %v383_v23 = vrot.slane %v382_v21, 1  ;;  %v390_v24 = vrot.slane %v389_v22, 1 }
  0x94   : > { %v384_v28 = vadd.f32 %v383_v23, %v382_v21  ;;  %v391_v29 = vadd.f32 %v390_v24, %v389_v22 }
  0x96   : > { %v399_v33 = vmul.f32 %v397_v25, %v384_v28  ;;  %v400_v34 = vmul.f32 %v398_v27, %v391_v29  ;;  %v428_v35 = vcombine.low %v384_v28, %v391_v29 }
  0x98   : > { %v403_v36 = vcombine.low %v399_v33, %v400_v34  ;;  %v435_v37 = vrot.slane %v428_v35, %v409_v32 }
  0x9a   : > { %v410_v39 = vrot.slane %v403_v36, %v409_v32  ;;  %v442_v40 = vrot.slane %v435_v37, %v409_v32 }
  0x9c   : > { %v417_v42 = vrot.slane %v410_v39, %v409_v32  ;;  %v444_v43 = vadd.f32 %v442_v40, %v425_v38 }
  0x9e   : > { %v419_v44 = vadd.f32 %v417_v42, %v392_v41  ;;  %445 = vst.msk [vmem:[#allocation3] sm:$0x3] %vm715_vm0, %v444_v43 }
  0xa0   : > { %424 = vst.msk [vmem:[#allocation2] sm:$0x3] %vm715_vm0, %v419_v44 }
  0xa5   : > { %v474_v26 = vld [vmem:[#allocation3] sm:$0x3] }
  0xa6   : > { %v479_v45 = vrot.slane %v474_v26, %v741_v30  ;;  %v483_v46 = vrot.slane %v474_v26, %v744_v31 }
  0xa7   : > { %v449_v47 = vld [vmem:[#allocation2] sm:$0x3] }
  0xa8   : > { %v486_v48 = vsel %vm461_vm4, %v479_v45, 0.0  ;;  %v487_v49 = vsel %vm461_vm4, %v483_v46, 0.0  ;;  %v454_v50 = vrot.slane %v449_v47, %v741_v30  ;;  %v458_v51 = vrot.slane %v449_v47, %v744_v31 }
  0xa9   : > { %v488_v52 = vadd.f32 %v487_v49, %v486_v48 }
  0xaa   : > { %v462_v53 = vsel %vm461_vm4, %v454_v50, 0.0  ;;  %v463_v54 = vsel %vm461_vm4, %v458_v51, 0.0 }
  0xab   : > { %489 = vadd.xlane.f32.xlu1 %v488_v52  ;;  %v464_v55 = vadd.f32 %v463_v54, %v462_v53 }
  0xad   : > { %465 = vadd.xlane.f32.xlu0 %v464_v55 }
 0x138   : > { %v490_v3 = vpop.xlane.xlu1 %489 }
 0x139   : > { %v491_v56 = vrot.slane %v490_v3, 4 }
 0x13a   : > { %v466_v57 = vpop.xlane.xlu0 %465 }
 0x13b   : > { %v492_v58 = vadd.f32 %v491_v56, %v490_v3  ;;  %v467_v59 = vrot.slane %v466_v57, 4 }
 0x13d   : > { %v493_v60 = vrot.slane %v492_v58, 2  ;;  %v468_v61 = vadd.f32 %v467_v59, %v466_v57 }
 0x13f   : > { %v494_v62 = vadd.f32 %v493_v60, %v492_v58  ;;  %v469_v63 = vrot.slane %v468_v61, 2 }
 0x141   : > { %v470_v0 = vadd.f32 %v469_v63, %v468_v61  ;;  %v495_v30 = vrot.slane %v494_v62, 1 }
 0x143   : > { %v471_v2 = vrot.slane %v470_v0, 1  ;;  %v496_v4 = vadd.f32 %v495_v30, %v494_v62 }
 0x145   : > { %v472_v31 = vadd.f32 %v471_v2, %v470_v0 }
 0x147   : > { %607 = vpush %v472_v31 }
 0x148   : > { %609 = vpush %v496_v4 }
 0x178   : > { %s608_s26 = spop %607 }
 0x179   : > { %v504_v6 = vstv %s608_s26  ;;  %s610_s27 = spop %609 }
 0x17a   : > { %v502_v7 = vstv %s610_s27 }
 0x17b   : > { %v503_v8 = vsel %vm501_vm5, %v502_v7, 0.0 }
 0x17c   : > { %v505_v9 = vsel %vm500_vm6, %v504_v6, %v503_v8 }
 0x17d   : > { %506 = vst [vmem:[%s284_s30] sm:$0x1] %v505_v9 }
 0x17e PF: > { %s13_s14 = sadd.s32 1, %s668_s14   ;;  %s803_s12 = smov %s664_s13 }
 0x17f   : > { %p10_p5 = scmp.ge.s32.totalorder %s13_s14, 4   ;;  %s804_s13 = smov %s806_s15 }
 0x181   :  { %12 = sbr.rel (!%p10_p5) target bundleno = 2 (0x2), region = 73 }

</bundles_post_ra>
